<compile_context>
chip_gen: v6e
topology: v6e:2x2x1
jax: 0.10.0
libtpu: 0.0.40
codegen_flags: <defaults>
</compile_context>

<pallas_src>
import functools

import jax
import jax.numpy as jnp
from jax import lax
from jax.experimental import pallas as pl
from jax.experimental.pallas import tpu as pltpu


def _attn_encoder_kernel(x_ref, w1_ref, b1_ref, w2_ref, o_ref, *,
                         mxu_dtype, valid_seq, approx_recip):
    TB, S, D = x_ref.shape
    x = x_ref[...]                                        # (TB, S, D), x.dtype

    # One large MXU matmul: flatten batch*seq rows into M (S % 8 == 0, so the
    # flatten is sublane-tile aligned and copy-free). W1 arrives pre-cast.
    xf = x.reshape(TB * S, D)
    h = jnp.tanh(
        jnp.dot(xf.astype(mxu_dtype), w1_ref[...],
                preferred_element_type=jnp.float32)
        + b1_ref[...]                                     # (1, D) broadcast, f32
    )                                                     # (TB*S, D) f32

    # Scores: VPU broadcast-multiply + lane reduce, keepdims so the sequence
    # stays on the sublane axis as (TB, S, 1) — no lane relayout.
    h3 = h.reshape(TB, S, D)
    s = jnp.sum(h3 * w2_ref[...], axis=-1, keepdims=True)  # (TB, S, 1) f32

    if valid_seq < S:
        # Padded sequence positions are NOT neutral (tanh(b1)·w2 != 0): mask
        # them to -inf so they get zero softmax weight.
        pos = lax.broadcasted_iota(jnp.int32, (TB, S, 1), 1)
        s = jnp.where(pos < valid_seq, s, -jnp.inf)

    # Softmax over the sequence (sublane) axis; reciprocal on the EUP.
    m = jnp.max(s, axis=1, keepdims=True)                 # (TB, 1, 1)
    e = jnp.exp(s - m)
    denom = jnp.sum(e, axis=1, keepdims=True)
    if approx_recip:
        a = e * pl.reciprocal(denom, approx=True)
    else:
        a = e / denom                                     # exact path for callers

    # Weighted sum over S: multiply in x.dtype (no f32 copy of the x block),
    # accumulate the sublane reduction in f32, store lane-dense (TB, D).
    out = jnp.sum(x * a.astype(x.dtype), axis=1, dtype=jnp.float32)
    o_ref[...] = out.astype(o_ref.dtype)


def _vmem_capacity_bytes():
    """Per-core VMEM capacity; conservative (v7x) fallback if the query fails."""
    try:
        return int(pltpu.get_tpu_info().vmem_capacity_bytes)
    except Exception:
        return 64 * 1024 * 1024


def _vmem_bytes_estimate(tb, S, D, x_bytes, w_bytes, *, x_buffers=2,
                         w_buffers=2, out_buffers=2):
    """Rough per-step VMEM footprint: pipelined x block, f32 tanh/matmul
    intermediate, resident weights, output buffers, softmax temporaries."""
    x_blk = tb * S * D * x_bytes * x_buffers
    h_f32 = tb * S * D * 4
    weights = D * D * w_bytes * w_buffers + 2 * D * 4 * w_buffers   # W1 + b1 + w2t
    out_blk = tb * D * x_bytes * out_buffers
    softmax = 4 * tb * S * 4
    return x_blk + h_f32 + weights + out_blk + softmax


def _pick_tb(B, S, D, x_bytes, w_bytes, budget_bytes, *, x_buffers=2, w_buffers=2):
    """Batch-block size: enough rows to fill the MXU (TB*S >= 256), capped by
    the VMEM budget and by keeping >= ~4 grid steps when the batch allows it."""
    per_tb = S * D * (x_bytes * x_buffers + 4) + 2 * D * x_bytes + 16 * S
    fixed = D * D * w_bytes * w_buffers + 2 * D * 4 * w_buffers
    cap = max(1, (budget_bytes - fixed) // per_tb)

    tb = pl.cdiv(256, S)                    # >= 256 MXU rows per grid step
    tb = min(tb, cap)
    if B > 8:                               # keep >= ~4 grid steps (overlap, 2-TC)
        tb = min(tb, max(8, pl.cdiv(B, 4)))
    if tb >= B:
        return B
    tb = max(8, (tb // 8) * 8)              # sublane-aligned (TB, D) output block
    return min(tb, B)


def self_attention_encoder(x, w1, b1, w2t, *, mxu_dtype=None,
                           approx_reciprocal=True, single_buffer_weights=True):
    """x: (B, S, D); w1: (D, D) used as x @ w1 (pre-transposed vs torch);
    b1: (1, D); w2t: (1, D) (the Linear(dim, 1) weight, transposed).
    mxu_dtype: dtype for the MXU operands (e.g. jnp.bfloat16). For the full
    HBM-bandwidth win, store/pass x itself as bf16."""
    B, S, D = x.shape
    if mxu_dtype is None:
        mxu_dtype = x.dtype

    # Pre-cast the MXU weight once in the wrapper (avoids a per-grid-step DxD
    # cast in-kernel); keep the small vector operands in f32 for VPU math.
    w1 = w1.astype(mxu_dtype)
    b1 = b1.astype(jnp.float32)
    w2t = w2t.astype(jnp.float32)

    # Keep S a multiple of 8 so the (TB, S, D) -> (TB*S, D) flatten stays
    # sublane-aligned; padded positions are masked to -inf in the kernel.
    S_pad = pl.cdiv(S, 8) * 8
    if S_pad != S:
        x = jnp.pad(x, ((0, 0), (0, S_pad - S), (0, 0)))

    x_bytes = jnp.dtype(x.dtype).itemsize
    w_bytes = jnp.dtype(mxu_dtype).itemsize
    w_buffers = 1 if single_buffer_weights else 2

    vmem_cap = _vmem_capacity_bytes()
    budget = min(vmem_cap // 2, 48 * 1024 * 1024)
    TB = _pick_tb(B, S_pad, D, x_bytes, w_bytes, budget, w_buffers=w_buffers)

    B_pad = pl.cdiv(B, TB) * TB
    if B_pad != B:
        # Zero batch padding is safe: softmax of constant scores is finite and
        # the weighted sum of zero rows is zero; padded rows are sliced off.
        x = jnp.pad(x, ((0, B_pad - B), (0, 0), (0, 0)))

    est = _vmem_bytes_estimate(TB, S_pad, D, x_bytes, w_bytes,
                               w_buffers=w_buffers)
    vmem_limit = int(min(vmem_cap * 3 // 4,
                         max(32 * 1024 * 1024, int(est * 1.5))))

    # Resident (constant-index) weight operands: single-buffered.
    weight_kwargs = ({"pipeline_mode": pl.Buffered(1)}
                     if single_buffer_weights else {})

    kernel = functools.partial(_attn_encoder_kernel, mxu_dtype=mxu_dtype,
                               valid_seq=S, approx_recip=approx_reciprocal)

    # TODO(synk): for tiny B with very large S*D, add an S grid axis with an
    # online-softmax accumulator instead of one giant (TB, S, D) block.
    out = pl.pallas_call(
        kernel,
        out_shape=jax.ShapeDtypeStruct((B_pad, D), x.dtype),
        grid_spec=pltpu.PrefetchScalarGridSpec(
            num_scalar_prefetch=0,
            grid=(B_pad // TB,),
            in_specs=[
                # x batch-block (double-buffered by default; sweep Buffered(3)
                # on v7x once VMEM headroom exists).
                pl.BlockSpec((TB, S_pad, D), lambda i: (i, 0, 0)),
                pl.BlockSpec((D, D), lambda i: (0, 0), **weight_kwargs),   # W1
                pl.BlockSpec((1, D), lambda i: (0, 0), **weight_kwargs),   # b1
                pl.BlockSpec((1, D), lambda i: (0, 0), **weight_kwargs),   # w2^T
            ],
            out_specs=pl.BlockSpec((TB, D), lambda i: (i, 0)),  # lane-dense slab
        ),
        compiler_params=pltpu.CompilerParams(
            dimension_semantics=("parallel",),
            vmem_limit_bytes=vmem_limit,
        ),
    )(x, w1, b1, w2t)

    return out[:B] if B_pad != B else out


def _run_encoder(x, w1, b1, w2t, **kw):
    """Call the Pallas encoder; fall back to double-buffered weights on JAX
    versions whose pallas_call does not accept BlockSpec.pipeline_mode."""
    try:
        return self_attention_encoder(x, w1, b1, w2t, **kw)
    except Exception:
        return self_attention_encoder(x, w1, b1, w2t,
                                      single_buffer_weights=False, **kw)


def _reference(x, w1, b1, w2t):
    h = jnp.tanh(x @ w1 + b1)                        # (B, S, D)
    s = jnp.einsum('bsd,d->bs', h, w2t[0])           # (B, S)
    a = jax.nn.softmax(s, axis=-1)[..., None]        # softmax over the sequence
    return (x * a).sum(axis=1)                       # (B, D)


if __name__ == "__main__":
    B, S, D = 2, 8, 32
    key = jax.random.PRNGKey(0)
    kx, kw1, kb1, kw2 = jax.random.split(key, 4)

    x = jax.random.normal(kx, (B, S, D), dtype=jnp.float32)
    # Shapes from nn.Linear(dim, dim) and nn.Linear(dim, 1, bias=False); w1 is
    # stored pre-transposed so x @ w1 matches torch's x @ W^T, and the (dim, 1)
    # score weight is passed transposed as (1, dim).
    w1 = jax.random.normal(kw1, (D, D), dtype=jnp.float32) * 0.1
    b1 = jax.random.normal(kb1, (1, D), dtype=jnp.float32) * 0.1
    w2t = jax.random.normal(kw2, (1, D), dtype=jnp.float32) * 0.1

    ref = _reference(x, w1, b1, w2t)

    # f32 path (tolerance covers the EUP approximate reciprocal in the softmax).
    out = jax.block_until_ready(_run_encoder(x, w1, b1, w2t))
    assert out.shape == (B, D)
    assert jnp.allclose(out, ref, atol=1e-3, rtol=1e-3), "f32 mismatch vs reference"

    # bf16 streaming path: halves HBM bytes on the dominant x transfer and
    # feeds the MXU bf16 operands (supported on v5e/v6e/v7x).
    out_bf16 = jax.block_until_ready(
        _run_encoder(x.astype(jnp.bfloat16), w1, b1, w2t,
                     mxu_dtype=jnp.bfloat16))
    assert out_bf16.shape == (B, D)
    assert jnp.allclose(out_bf16.astype(jnp.float32), ref, atol=1e-1, rtol=1e-1), \
        "bf16 mismatch vs reference"

    print("KERNEL_OK")
</pallas_src>

<mosaic_0001>
module attributes {stable_mosaic.version = 11 : i64} {
  func.func @_attn_encoder_kernel(%arg0: i32, %arg1: memref<2x8x32xf32, #tpu.memory_space<vmem>>, %arg2: memref<32x32xf32, #tpu.memory_space<vmem>>, %arg3: memref<1x32xf32, #tpu.memory_space<vmem>>, %arg4: memref<1x32xf32, #tpu.memory_space<vmem>>, %arg5: memref<2x32xf32, #tpu.memory_space<vmem>>) attributes {dimension_semantics = [#tpu.dimension_semantics<parallel>], iteration_bounds = array<i64: 1>, scalar_prefetch = 0 : i64, scratch_operands = 0 : i64, tpu.core_type = #tpu.core_type<tc>, window_params = [{transform_indices = @transform_0, window_bounds = array<i64: 2, 8, 32>}, {pipeline_mode = #tpu.pipeline_mode<synchronous>, transform_indices = @transform_1, window_bounds = array<i64: 32, 32>}, {pipeline_mode = #tpu.pipeline_mode<synchronous>, transform_indices = @transform_2, window_bounds = array<i64: 1, 32>}, {pipeline_mode = #tpu.pipeline_mode<synchronous>, transform_indices = @transform_3, window_bounds = array<i64: 1, 32>}, {transform_indices = @transform_4, window_bounds = array<i64: 2, 32>}]} {
    %c0 = arith.constant 0 : index
    %c0_0 = arith.constant 0 : index
    %c0_1 = arith.constant 0 : index
    %0 = vector.load %arg1[%c0, %c0_0, %c0_1] : memref<2x8x32xf32, #tpu.memory_space<vmem>>, vector<2x8x32xf32>
    %1 = vector.shape_cast %0 : vector<2x8x32xf32> to vector<16x32xf32>
    %c0_2 = arith.constant 0 : index
    %c0_3 = arith.constant 0 : index
    %2 = vector.load %arg2[%c0_2, %c0_3] : memref<32x32xf32, #tpu.memory_space<vmem>>, vector<32x32xf32>
    %cst = arith.constant dense<0.000000e+00> : vector<16x32xf32>
    %3 = tpu.matmul %1, %2, %cst {dimension_numbers = #tpu.dot_dimension_numbers<[1], [0], [0], [1], [0, 0, 1, 1], [], []>} : vector<16x32xf32>, vector<32x32xf32>, vector<16x32xf32> -> vector<16x32xf32>
    %c0_4 = arith.constant 0 : index
    %c0_5 = arith.constant 0 : index
    %4 = vector.load %arg3[%c0_4, %c0_5] : memref<1x32xf32, #tpu.memory_space<vmem>>, vector<1x32xf32>
    %5 = vector.broadcast %4 : vector<1x32xf32> to vector<16x32xf32>
    %6 = arith.addf %3, %5 : vector<16x32xf32>
    %7 = math.tanh %6 : vector<16x32xf32>
    %8 = vector.shape_cast %7 : vector<16x32xf32> to vector<2x8x32xf32>
    %c0_6 = arith.constant 0 : index
    %c0_7 = arith.constant 0 : index
    %9 = vector.load %arg4[%c0_6, %c0_7] : memref<1x32xf32, #tpu.memory_space<vmem>>, vector<1x32xf32>
    %10 = vector.shape_cast %9 : vector<1x32xf32> to vector<1x1x32xf32>
    %11 = vector.broadcast %10 : vector<1x1x32xf32> to vector<2x8x32xf32>
    %12 = arith.mulf %8, %11 : vector<2x8x32xf32>
    %cst_8 = arith.constant dense<0.000000e+00> : vector<2x8xf32>
    %13 = vector.multi_reduction <add>, %12, %cst_8 [2] : vector<2x8x32xf32> to vector<2x8xf32>
    %14 = vector.shape_cast %13 : vector<2x8xf32> to vector<2x8x1xf32>
    %cst_9 = arith.constant dense<0xFF800000> : vector<2x1xf32>
    %15 = vector.multi_reduction <maximumf>, %14, %cst_9 [1] : vector<2x8x1xf32> to vector<2x1xf32>
    %16 = vector.shape_cast %15 : vector<2x1xf32> to vector<2x1x1xf32>
    %17 = vector.broadcast %16 : vector<2x1x1xf32> to vector<2x8x1xf32>
    %18 = arith.subf %14, %17 : vector<2x8x1xf32>
    %19 = math.exp %18 : vector<2x8x1xf32>
    %cst_10 = arith.constant dense<0.000000e+00> : vector<2x1xf32>
    %20 = vector.multi_reduction <add>, %19, %cst_10 [1] : vector<2x8x1xf32> to vector<2x1xf32>
    %21 = vector.shape_cast %20 : vector<2x1xf32> to vector<2x1x1xf32>
    %22 = tpu.reciprocal %21 {approx = true} : vector<2x1x1xf32> -> vector<2x1x1xf32>
    %23 = vector.broadcast %22 : vector<2x1x1xf32> to vector<2x8x1xf32>
    %24 = arith.mulf %19, %23 : vector<2x8x1xf32>
    %25 = vector.broadcast %24 : vector<2x8x1xf32> to vector<2x8x32xf32>
    %26 = arith.mulf %0, %25 : vector<2x8x32xf32>
    %cst_11 = arith.constant dense<0.000000e+00> : vector<2x32xf32>
    %27 = vector.multi_reduction <add>, %26, %cst_11 [1] : vector<2x8x32xf32> to vector<2x32xf32>
    %c0_12 = arith.constant 0 : index
    %c0_13 = arith.constant 0 : index
    %28 = vector.load %arg5[%c0_12, %c0_13] : memref<2x32xf32, #tpu.memory_space<vmem>>, vector<2x32xf32>
    tpu.vector_store %arg5[%c0_12, %c0_13], %27 {strides = array<i32>} : memref<2x32xf32, #tpu.memory_space<vmem>>, vector<2x32xf32>,
    return
  }
  func.func @transform_0(%arg0: i32) -> (i32, i32, i32) {
    %c0_i32 = arith.constant 0 : i32
    %c0_i32_0 = arith.constant 0 : i32
    %c0_i32_1 = arith.constant 0 : i32
    return %arg0, %c0_i32, %c0_i32_0 : i32, i32, i32
  }
  func.func @transform_1(%arg0: i32) -> (i32, i32) {
    %c0_i32 = arith.constant 0 : i32
    %c0_i32_0 = arith.constant 0 : i32
    %c0_i32_1 = arith.constant 0 : i32
    return %c0_i32, %c0_i32_0 : i32, i32
  }
  func.func @transform_2(%arg0: i32) -> (i32, i32) {
    %c0_i32 = arith.constant 0 : i32
    %c0_i32_0 = arith.constant 0 : i32
    %c0_i32_1 = arith.constant 0 : i32
    return %c0_i32, %c0_i32_0 : i32, i32
  }
  func.func @transform_3(%arg0: i32) -> (i32, i32) {
    %c0_i32 = arith.constant 0 : i32
    %c0_i32_0 = arith.constant 0 : i32
    %c0_i32_1 = arith.constant 0 : i32
    return %c0_i32, %c0_i32_0 : i32, i32
  }
  func.func @transform_4(%arg0: i32) -> (i32, i32) {
    %c0_i32 = arith.constant 0 : i32
    %c0_i32_0 = arith.constant 0 : i32
    return %arg0, %c0_i32 : i32, i32
  }
}

module attributes {stable_mosaic.version = 11 : i64} {
  func.func @_attn_encoder_kernel(%arg0: i32, %arg1: memref<2x8x32xf32, #tpu.memory_space<vmem>>, %arg2: memref<32x32xf32, #tpu.memory_space<vmem>>, %arg3: memref<1x32xf32, #tpu.memory_space<vmem>>, %arg4: memref<1x32xf32, #tpu.memory_space<vmem>>, %arg5: memref<2x32xf32, #tpu.memory_space<vmem>>) attributes {dimension_semantics = [#tpu.dimension_semantics<parallel>], iteration_bounds = array<i64: 1>, scalar_prefetch = 0 : i64, scratch_operands = 0 : i64, tpu.core_type = #tpu.core_type<tc>, window_params = [{transform_indices = @transform_0, window_bounds = array<i64: 2, 8, 32>}, {pipeline_mode = #tpu.pipeline_mode<synchronous>, transform_indices = @transform_1, window_bounds = array<i64: 32, 32>}, {pipeline_mode = #tpu.pipeline_mode<synchronous>, transform_indices = @transform_2, window_bounds = array<i64: 1, 32>}, {pipeline_mode = #tpu.pipeline_mode<synchronous>, transform_indices = @transform_3, window_bounds = array<i64: 1, 32>}, {transform_indices = @transform_4, window_bounds = array<i64: 2, 32>}]} {
    %c0 = arith.constant 0 : index
    %c0_0 = arith.constant 0 : index
    %c0_1 = arith.constant 0 : index
    %0 = vector.load %arg1[%c0, %c0_0, %c0_1] : memref<2x8x32xf32, #tpu.memory_space<vmem>>, vector<2x8x32xf32>
    %1 = vector.shape_cast %0 : vector<2x8x32xf32> to vector<16x32xf32>
    %c0_2 = arith.constant 0 : index
    %c0_3 = arith.constant 0 : index
    %2 = vector.load %arg2[%c0_2, %c0_3] : memref<32x32xf32, #tpu.memory_space<vmem>>, vector<32x32xf32>
    %cst = arith.constant dense<0.000000e+00> : vector<16x32xf32>
    %3 = tpu.matmul %1, %2, %cst {dimension_numbers = #tpu.dot_dimension_numbers<[1], [0], [0], [1], [0, 0, 1, 1], [], []>} : vector<16x32xf32>, vector<32x32xf32>, vector<16x32xf32> -> vector<16x32xf32>
    %c0_4 = arith.constant 0 : index
    %c0_5 = arith.constant 0 : index
    %4 = vector.load %arg3[%c0_4, %c0_5] : memref<1x32xf32, #tpu.memory_space<vmem>>, vector<1x32xf32>
    %5 = vector.broadcast %4 : vector<1x32xf32> to vector<16x32xf32>
    %6 = arith.addf %3, %5 : vector<16x32xf32>
    %7 = math.tanh %6 : vector<16x32xf32>
    %8 = vector.shape_cast %7 : vector<16x32xf32> to vector<2x8x32xf32>
    %c0_6 = arith.constant 0 : index
    %c0_7 = arith.constant 0 : index
    %9 = vector.load %arg4[%c0_6, %c0_7] : memref<1x32xf32, #tpu.memory_space<vmem>>, vector<1x32xf32>
    %10 = vector.shape_cast %9 : vector<1x32xf32> to vector<1x1x32xf32>
    %11 = vector.broadcast %10 : vector<1x1x32xf32> to vector<2x8x32xf32>
    %12 = arith.mulf %8, %11 : vector<2x8x32xf32>
    %cst_8 = arith.constant dense<0.000000e+00> : vector<2x8xf32>
    %13 = vector.multi_reduction <add>, %12, %cst_8 [2] : vector<2x8x32xf32> to vector<2x8xf32>
    %14 = vector.shape_cast %13 : vector<2x8xf32> to vector<2x8x1xf32>
    %cst_9 = arith.constant dense<0xFF800000> : vector<2x1xf32>
    %15 = vector.multi_reduction <maximumf>, %14, %cst_9 [1] : vector<2x8x1xf32> to vector<2x1xf32>
    %16 = vector.shape_cast %15 : vector<2x1xf32> to vector<2x1x1xf32>
    %17 = vector.broadcast %16 : vector<2x1x1xf32> to vector<2x8x1xf32>
    %18 = arith.subf %14, %17 : vector<2x8x1xf32>
    %19 = math.exp %18 : vector<2x8x1xf32>
    %cst_10 = arith.constant dense<0.000000e+00> : vector<2x1xf32>
    %20 = vector.multi_reduction <add>, %19, %cst_10 [1] : vector<2x8x1xf32> to vector<2x1xf32>
    %21 = vector.shape_cast %20 : vector<2x1xf32> to vector<2x1x1xf32>
    %22 = tpu.reciprocal %21 {approx = true} : vector<2x1x1xf32> -> vector<2x1x1xf32>
    %23 = vector.broadcast %22 : vector<2x1x1xf32> to vector<2x8x1xf32>
    %24 = arith.mulf %19, %23 : vector<2x8x1xf32>
    %25 = vector.broadcast %24 : vector<2x8x1xf32> to vector<2x8x32xf32>
    %26 = arith.mulf %0, %25 : vector<2x8x32xf32>
    %cst_11 = arith.constant dense<0.000000e+00> : vector<2x32xf32>
    %27 = vector.multi_reduction <add>, %26, %cst_11 [1] : vector<2x8x32xf32> to vector<2x32xf32>
    %c0_12 = arith.constant 0 : index
    %c0_13 = arith.constant 0 : index
    %28 = vector.load %arg5[%c0_12, %c0_13] : memref<2x32xf32, #tpu.memory_space<vmem>>, vector<2x32xf32>
    tpu.vector_store %arg5[%c0_12, %c0_13], %27 {strides = array<i32>} : memref<2x32xf32, #tpu.memory_space<vmem>>, vector<2x32xf32>,
    return
  }
  func.func @transform_0(%arg0: i32) -> (i32, i32, i32) {
    %c0_i32 = arith.constant 0 : i32
    %c0_i32_0 = arith.constant 0 : i32
    %c0_i32_1 = arith.constant 0 : i32
    return %arg0, %c0_i32, %c0_i32_0 : i32, i32, i32
  }
  func.func @transform_1(%arg0: i32) -> (i32, i32) {
    %c0_i32 = arith.constant 0 : i32
    %c0_i32_0 = arith.constant 0 : i32
    %c0_i32_1 = arith.constant 0 : i32
    return %c0_i32, %c0_i32_0 : i32, i32
  }
  func.func @transform_2(%arg0: i32) -> (i32, i32) {
    %c0_i32 = arith.constant 0 : i32
    %c0_i32_0 = arith.constant 0 : i32
    %c0_i32_1 = arith.constant 0 : i32
    return %c0_i32, %c0_i32_0 : i32, i32
  }
  func.func @transform_3(%arg0: i32) -> (i32, i32) {
    %c0_i32 = arith.constant 0 : i32
    %c0_i32_0 = arith.constant 0 : i32
    %c0_i32_1 = arith.constant 0 : i32
    return %c0_i32, %c0_i32_0 : i32, i32
  }
  func.func @transform_4(%arg0: i32) -> (i32, i32) {
    %c0_i32 = arith.constant 0 : i32
    %c0_i32_0 = arith.constant 0 : i32
    return %arg0, %c0_i32 : i32, i32
  }
}

</mosaic_0001>

<bundles_post_ra>
// kernel: tpu_custom_call.1
= control target key start
LH: loop header
LB: loop body
LE: loop exit
PB: predicated region body
PF: predicated region fallthrough
CT: control target
= control target key end

     0   :  { %9 = vsyncpa [#allocation3], 0  ;;  %s394_s0 = inlined_call_operand.hbm [shape: f32[2,8,32], index: 0, kind: input, shape index: {}]   ;;  %s395_s1 = inlined_call_operand.hbm [shape: f32[32,32], index: 1, kind: input, shape index: {}]   ;;  %s396_s2 = inlined_call_operand.vmem [shape: f32[1,32], index: 2, kind: input, shape index: {}]   ;;  %s397_s3 = inlined_call_operand.vmem [shape: f32[1,32], index: 3, kind: input, shape index: {}]   ;;  %s398_s4 = inlined_call_operand.hbm [shape: f32[2,32], index: 4, kind: output, shape index: {}]  }
   0x1   :  { %10 = vsyncpa [#allocation6], 0 }
   0x2   :  { %11 = vsyncpa [#allocation4], 0  ;;  %s335_s15 = smov [#allocation2]  }
   0x3   :  { %s17_s16 = sshll.u32 %s335_s15, 4  ;;  %s18_s16 = int_to_ptr.vmem [resolvable:$true] %s17_s16 }
   0x4   :  { %s277_s17 = scalar_lea.vmem %s18_s16, 256  ;;  %p282_p1 = scmp.lt.s32.totalorder %s18_s16, %s18_s16 }
   0x5   :  { %p278_p0 = scmp.ne.s32.totalorder %s18_s16, %s277_s17  ;;  %p283_p2 = scmp.lt.s32.totalorder %s277_s17, %s277_s17 }
   0x7   :  { %p284_p3 = por %p283_p2, %p282_p1 }
   0x9   :  { %p285_p4 = pnand %p284_p3, %p278_p0 }
   0xb   :  { %288 = shalt.err (!%p285_p4)
}
   0xc   :  { %s336_s18 = smov 128   ;;  %s337_s19 = smov 8  }
   0xd   :  { %23 = dma.hbm_to_vmem [thread:$0]  %s394_s0, 256, %s18_s16, [#allocation3], %s336_s18, %s336_s18, %s337_s19  }
   0xe   :  { %s338_s22 = smov [#allocation5]  }
   0xf   :  { %s29_s23 = sshll.u32 %s338_s22, 4  ;;  %s30_s23 = int_to_ptr.vmem [resolvable:$true] %s29_s23 }
  0x10   :  { %s297_s24 = scalar_lea.vmem %s30_s23, 512  ;;  %p302_p6 = scmp.lt.s32.totalorder %s30_s23, %s30_s23 }
  0x11   :  { %p298_p5 = scmp.ne.s32.totalorder %s30_s23, %s297_s24  ;;  %p303_p7 = scmp.lt.s32.totalorder %s297_s24, %s297_s24 }
  0x13   :  { %p304_p8 = por %p303_p7, %p302_p6 }
  0x15   :  { %p305_p9 = pnand %p304_p8, %p298_p5 }
  0x17   :  { %308 = shalt.err (!%p305_p9)
}
  0x18   :  { %35 = dma.hbm_to_vmem [thread:$0]  %s395_s1, 512, %s30_s23, [#allocation6], %s336_s18, %s336_s18, %s337_s19  }
  0x19   :  { %329 = dma.done.wait [#allocation3], 256  }
  0x1a   :  { %330 = vsyncadd [#allocation3], 4294967040 }
  0x1b   :  { %331 = dma.done.wait [#allocation6], 512  }
  0x1c   :  { %332 = vsyncadd [#allocation6], 4294966784  ;;  %vm59_vm0 = vcmask 261120   ;;  %v51_v0 = vld [vmem:[#allocation5 + $0x18] sm:$0xff]  ;;  %v50_v1 = vld [vmem:[#allocation5 + $0x10] sm:$0xff]  ;;  %vm210_vm1 = vcmask 1041409  }
  0x1d   :  { %241 = vmatprep.subr.mxu0 %v51_v0  ;;  %v371_v2 = vld [vmem:[#allocation2] sm:$0xff]  ;;  %v49_v3 = vld [vmem:[#allocation5 + $0x8] sm:$0xff]  ;;  %v48_v4 = vld [vmem:[#allocation5] sm:$0xff]  ;;  %vm213_vm2 = vcmask 254976  }
  0x1e   :  { %242 = vmatpush3.msra.mxu0 %v51_v0  ;;  %249 = vmatprep.mubr.msk.f32.mxu0 %vm59_vm0, %v371_v2  ;;  %v375_v5 = vld [vmem:[#allocation2 + $0x8] sm:$0xff]  ;;  %v231_v6 = vld [vmem:[%s396_s2] ss:$0 sm:$0xff]  ;;  %s339_s2 = smov [#allocation7]  }
  0x1f   :  { %243 = vmatprep.subr.mxu0 %v50_v1  ;;  %v234_v13 = vld [vmem:[%s397_s3] ss:$0 sm:$0xff]  ;;  %s221_s3 = sshll.u32 %s339_s2, 4  ;;  %s222_s3 = int_to_ptr.vmem [resolvable:$true] %s221_s3 }
  0x20   :  { %244 = vmatpush3.msra.mxu0 %v50_v1  ;;  %s309_s29 = scalar_lea.vmem %s222_s3, 32  ;;  %p314_p11 = scmp.lt.s32.totalorder %s222_s3, %s222_s3 }
  0x21   :  { %245 = vmatprep.subr.mxu0 %v49_v3  ;;  %p310_p10 = scmp.ne.s32.totalorder %s222_s3, %s309_s29  ;;  %p315_p12 = scmp.lt.s32.totalorder %s309_s29, %s309_s29 }
  0x22   :  { %246 = vmatpush3.msra.mxu0 %v49_v3 }
  0x23   :  { %247 = vmatprep.subr.mxu0 %v48_v4  ;;  %p316_p13 = por %p315_p12, %p314_p11 }
  0x24   :  { %248 = vmatpush3.msra.mxu0 %v48_v4 }
  0x25   :  { %250 = vmatmul.mubr.msk.f32.vlgmr.msra.gmra.mxu0 %vm59_vm0, %v375_v5  ;;  %p317_p0 = pnand %p316_p13, %p310_p10 }
  0xe5   :  { %v251_v7 = vpop.f32.mrf.mxu0 }
  0xe6   :  { %v138_v8 = vadd.f32 %v251_v7, %v231_v6 }
  0xe7   :  { %v132_v9 = vpop.f32.mrf.mxu0 }
  0xe8   :  { %v133_v10 = vadd.f32 %v231_v6, %v132_v9  ;;  %257 = vtanh.f32 %v138_v8 }
  0xea   :  { %259 = vtanh.f32 %v133_v10 }
  0xf5   :  { %v258_v11 = vpop.eup %257 }
  0xf6   :  { %v151_v16 = vmul.f32 %v258_v11, %v234_v13 }
  0xf7   :  { %v260_v12 = vpop.eup %259 }
  0xf8   :  { %v150_v14 = vmul.f32 %v260_v12, %v234_v13  ;;  %v155_v17 = vsel %vm59_vm0, %v151_v16, 0.0 }
  0xfa   :  { %v152_v15 = vsel %vm59_vm0, %v150_v14, 0.0 }
  0xfb   :  { %153 = vadd.xlane.f32.xlu0 %v152_v15 }
  0xff   :  { %156 = vadd.xlane.f32.xlu0 %v155_v17 }
 0x184   :  { %v154_v18 = vpop.xlane.xlu0 %153 }
 0x185   :  { %v158_v19 = vrot.slane %v154_v18, 4 }
 0x187   :  { %v159_v20 = vmax.f32 %v154_v18, %v158_v19 }
 0x188   :  { %v157_v21 = vpop.xlane.xlu0 %156 }
 0x189   :  { %v160_v22 = vrot.slane %v159_v20, 2  ;;  %v164_v23 = vrot.slane %v157_v21, 4 }
 0x18b   :  { %v161_v24 = vmax.f32 %v159_v20, %v160_v22  ;;  %v165_v25 = vmax.f32 %v157_v21, %v164_v23 }
 0x18d   :  { %v162_v26 = vrot.slane %v161_v24, 1  ;;  %v166_v27 = vrot.slane %v165_v25, 2 }
 0x18f   :  { %v163_v28 = vmax.f32 %v161_v24, %v162_v26  ;;  %v167_v29 = vmax.f32 %v165_v25, %v166_v27 }
 0x191   :  { %v170_v30 = vsub.f32 %v154_v18, %v163_v28  ;;  %v168_v31 = vrot.slane %v167_v29, 1 }
 0x193   :  { %v172_v32 = vmul.f32 1.442695, %v170_v30  ;;  %v169_v33 = vmax.f32 %v167_v29, %v168_v31 }
 0x195   :  { %261 = vpow2.f32 %v172_v32  ;;  %v171_v34 = vsub.f32 %v157_v21, %v169_v33 }
 0x197   :  { %v174_v35 = vmul.f32 1.442695, %v171_v34 }
 0x199   :  { %263 = vpow2.f32 %v174_v35 }
 0x1a2   :  { %v262_v36 = vpop.eup %261 }
 0x1a3   :  { %v176_v37 = vrot.slane %v262_v36, 4 }
 0x1a5   :  { %v177_v38 = vadd.f32 %v262_v36, %v176_v37 }
 0x1a6   :  { %v264_v39 = vpop.eup %263 }
 0x1a7   :  { %v182_v40 = vrot.slane %v264_v39, 4  ;;  %v178_v41 = vrot.slane %v177_v38, 2 }
 0x1a9   :  { %v183_v42 = vadd.f32 %v264_v39, %v182_v40  ;;  %v179_v43 = vadd.f32 %v178_v41, %v177_v38 }
 0x1ab   :  { %v180_v44 = vrot.slane %v179_v43, 1  ;;  %v184_v45 = vrot.slane %v183_v42, 2 }
 0x1ad   :  { %v181_v46 = vadd.f32 %v180_v44, %v179_v43  ;;  %v185_v47 = vadd.f32 %v184_v45, %v183_v42 }
 0x1af   :  { %v186_v48 = vrot.slane %v185_v47, 1  ;;  %265 = vrcp.f32 %v181_v46 }
 0x1b1   :  { %v187_v49 = vadd.f32 %v186_v48, %v185_v47 }
 0x1b3   :  { %267 = vrcp.f32 %v187_v49 }
 0x1bc   :  { %v266_v50 = vpop.eup %265 }
 0x1bd   :  { %v190_v51 = vmul.f32 %v266_v50, %v262_v36 }
 0x1bf   :  { %v192_v52 = vmul.f32 %v190_v51, %v371_v2 }
 0x1c0   :  { %v268_v53 = vpop.eup %267 }
 0x1c1   :  { %v191_v54 = vmul.f32 %v268_v53, %v264_v39  ;;  %v194_v55 = vsel %vm59_vm0, %v192_v52, 0.0 }
 0x1c2   :  { %v195_v56 = vrot.slane %v194_v55, 4 }
 0x1c3   :  { %v193_v57 = vmul.f32 %v191_v54, %v375_v5 }
 0x1c4   :  { %v196_v58 = vadd.f32 %v195_v56, %v194_v55 }
 0x1c5   :  { %v201_v59 = vsel %vm59_vm0, %v193_v57, 0.0 }
 0x1c6   :  { %v197_v60 = vrot.slane %v196_v58, 2  ;;  %v202_v61 = vrot.slane %v201_v59, 4 }
 0x1c8   :  { %v198_v62 = vadd.f32 %v197_v60, %v196_v58  ;;  %v203_v63 = vadd.f32 %v202_v61, %v201_v59 }
 0x1ca   :  { %v204_v0 = vrot.slane %v203_v63, 2  ;;  %v199_v1 = vrot.slane %v198_v62, 1 }
 0x1cc   :  { %v205_v3 = vadd.f32 %v204_v0, %v203_v63  ;;  %v200_v2 = vadd.f32 %v199_v1, %v198_v62 }
 0x1ce   :  { %v206_v4 = vrot.slane %v205_v3, 1 }
 0x1d0   :  { %v207_v6 = vadd.f32 %v206_v4, %v205_v3 }
 0x1d2   :  { %v211_v7 = vsel %vm210_vm1, %v207_v6, %v200_v2 }
 0x1d3   :  { %214 = vst.msk [vmem:[#allocation7] sm:$0x3] %vm213_vm2, %v211_v7 }
 0x1d4   :  { %320 = shalt.err (!%p317_p0)
}
 0x1d5   :  { %224 = dma.vmem_to_hbm [thread:$0]  %s222_s3, 32, %s398_s4, [#allocation4]  }
 0x1d6   :  { %333 = dma.done.wait [#allocation4], 32  }
 0x1d7   :  { %334 = vsyncadd [#allocation4], 4294967264 }
 0x1d8   :  { %228 = vsyncpa [#allocation3], 1 }
 0x1d9   :  { %229 = vsyncpa [#allocation6], 1 }
 0x1da   :  { %230 = vsyncpa [#allocation4], 1 }

// kernel: tpu_custom_call.1
= control target key start
LH: loop header
LB: loop body
LE: loop exit
PB: predicated region body
PF: predicated region fallthrough
CT: control target
= control target key end

     0   :  { %9 = vsyncpa [#allocation3], 0  ;;  %s394_s0 = inlined_call_operand.hbm [shape: f32[2,8,32], index: 0, kind: input, shape index: {}]   ;;  %s395_s1 = inlined_call_operand.hbm [shape: f32[32,32], index: 1, kind: input, shape index: {}]   ;;  %s396_s2 = inlined_call_operand.vmem [shape: f32[1,32], index: 2, kind: input, shape index: {}]   ;;  %s397_s3 = inlined_call_operand.vmem [shape: f32[1,32], index: 3, kind: input, shape index: {}]   ;;  %s398_s4 = inlined_call_operand.hbm [shape: f32[2,32], index: 4, kind: output, shape index: {}]  }
   0x1   :  { %10 = vsyncpa [#allocation6], 0 }
   0x2   :  { %11 = vsyncpa [#allocation4], 0  ;;  %s335_s15 = smov [#allocation2]  }
   0x3   :  { %s17_s16 = sshll.u32 %s335_s15, 4  ;;  %s18_s16 = int_to_ptr.vmem [resolvable:$true] %s17_s16 }
   0x4   :  { %s277_s17 = scalar_lea.vmem %s18_s16, 256  ;;  %p282_p1 = scmp.lt.s32.totalorder %s18_s16, %s18_s16 }
   0x5   :  { %p278_p0 = scmp.ne.s32.totalorder %s18_s16, %s277_s17  ;;  %p283_p2 = scmp.lt.s32.totalorder %s277_s17, %s277_s17 }
   0x7   :  { %p284_p3 = por %p283_p2, %p282_p1 }
   0x9   :  { %p285_p4 = pnand %p284_p3, %p278_p0 }
   0xb   :  { %288 = shalt.err (!%p285_p4)
}
   0xc   :  { %s336_s18 = smov 128   ;;  %s337_s19 = smov 8  }
   0xd   :  { %23 = dma.hbm_to_vmem [thread:$0]  %s394_s0, 256, %s18_s16, [#allocation3], %s336_s18, %s336_s18, %s337_s19  }
   0xe   :  { %s338_s22 = smov [#allocation5]  }
   0xf   :  { %s29_s23 = sshll.u32 %s338_s22, 4  ;;  %s30_s23 = int_to_ptr.vmem [resolvable:$true] %s29_s23 }
  0x10   :  { %s297_s24 = scalar_lea.vmem %s30_s23, 512  ;;  %p302_p6 = scmp.lt.s32.totalorder %s30_s23, %s30_s23 }
  0x11   :  { %p298_p5 = scmp.ne.s32.totalorder %s30_s23, %s297_s24  ;;  %p303_p7 = scmp.lt.s32.totalorder %s297_s24, %s297_s24 }
  0x13   :  { %p304_p8 = por %p303_p7, %p302_p6 }
  0x15   :  { %p305_p9 = pnand %p304_p8, %p298_p5 }
  0x17   :  { %308 = shalt.err (!%p305_p9)
}
  0x18   :  { %35 = dma.hbm_to_vmem [thread:$0]  %s395_s1, 512, %s30_s23, [#allocation6], %s336_s18, %s336_s18, %s337_s19  }
  0x19   :  { %329 = dma.done.wait [#allocation3], 256  }
  0x1a   :  { %330 = vsyncadd [#allocation3], 4294967040 }
  0x1b   :  { %331 = dma.done.wait [#allocation6], 512  }
  0x1c   :  { %332 = vsyncadd [#allocation6], 4294966784  ;;  %vm59_vm0 = vcmask 261120   ;;  %v51_v0 = vld [vmem:[#allocation5 + $0x18] sm:$0xff]  ;;  %v50_v1 = vld [vmem:[#allocation5 + $0x10] sm:$0xff]  ;;  %vm210_vm1 = vcmask 1041409  }
  0x1d   :  { %241 = vmatprep.subr.mxu0 %v51_v0  ;;  %v371_v2 = vld [vmem:[#allocation2] sm:$0xff]  ;;  %v49_v3 = vld [vmem:[#allocation5 + $0x8] sm:$0xff]  ;;  %v48_v4 = vld [vmem:[#allocation5] sm:$0xff]  ;;  %vm213_vm2 = vcmask 254976  }
  0x1e   :  { %242 = vmatpush3.msra.mxu0 %v51_v0  ;;  %249 = vmatprep.mubr.msk.f32.mxu0 %vm59_vm0, %v371_v2  ;;  %v375_v5 = vld [vmem:[#allocation2 + $0x8] sm:$0xff]  ;;  %v231_v6 = vld [vmem:[%s396_s2] ss:$0 sm:$0xff]  ;;  %s339_s2 = smov [#allocation7]  }
  0x1f   :  { %243 = vmatprep.subr.mxu0 %v50_v1  ;;  %v234_v13 = vld [vmem:[%s397_s3] ss:$0 sm:$0xff]  ;;  %s221_s3 = sshll.u32 %s339_s2, 4  ;;  %s222_s3 = int_to_ptr.vmem [resolvable:$true] %s221_s3 }
  0x20   :  { %244 = vmatpush3.msra.mxu0 %v50_v1  ;;  %s309_s29 = scalar_lea.vmem %s222_s3, 32  ;;  %p314_p11 = scmp.lt.s32.totalorder %s222_s3, %s222_s3 }
  0x21   :  { %245 = vmatprep.subr.mxu0 %v49_v3  ;;  %p310_p10 = scmp.ne.s32.totalorder %s222_s3, %s309_s29  ;;  %p315_p12 = scmp.lt.s32.totalorder %s309_s29, %s309_s29 }
  0x22   :  { %246 = vmatpush3.msra.mxu0 %v49_v3 }
  0x23   :  { %247 = vmatprep.subr.mxu0 %v48_v4  ;;  %p316_p13 = por %p315_p12, %p314_p11 }
  0x24   :  { %248 = vmatpush3.msra.mxu0 %v48_v4 }
  0x25   :  { %250 = vmatmul.mubr.msk.f32.vlgmr.msra.gmra.mxu0 %vm59_vm0, %v375_v5  ;;  %p317_p0 = pnand %p316_p13, %p310_p10 }
  0xe5   :  { %v251_v7 = vpop.f32.mrf.mxu0 }
  0xe6   :  { %v138_v8 = vadd.f32 %v251_v7, %v231_v6 }
  0xe7   :  { %v132_v9 = vpop.f32.mrf.mxu0 }
  0xe8   :  { %v133_v10 = vadd.f32 %v231_v6, %v132_v9  ;;  %257 = vtanh.f32 %v138_v8 }
  0xea   :  { %259 = vtanh.f32 %v133_v10 }
  0xf5   :  { %v258_v11 = vpop.eup %257 }
  0xf6   :  { %v151_v16 = vmul.f32 %v258_v11, %v234_v13 }
  0xf7   :  { %v260_v12 = vpop.eup %259 }
  0xf8   :  { %v150_v14 = vmul.f32 %v260_v12, %v234_v13  ;;  %v155_v17 = vsel %vm59_vm0, %v151_v16, 0.0 }
  0xfa   :  { %v152_v15 = vsel %vm59_vm0, %v150_v14, 0.0 }
  0xfb   :  { %153 = vadd.xlane.f32.xlu0 %v152_v15 }
  0xff   :  { %156 = vadd.xlane.f32.xlu0 %v155_v17 }
 0x184   :  { %v154_v18 = vpop.xlane.xlu0 %153 }
 0x185   :  { %v158_v19 = vrot.slane %v154_v18, 4 }
 0x187   :  { %v159_v20 = vmax.f32 %v154_v18, %v158_v19 }
 0x188   :  { %v157_v21 = vpop.xlane.xlu0 %156 }
 0x189   :  { %v160_v22 = vrot.slane %v159_v20, 2  ;;  %v164_v23 = vrot.slane %v157_v21, 4 }
 0x18b   :  { %v161_v24 = vmax.f32 %v159_v20, %v160_v22  ;;  %v165_v25 = vmax.f32 %v157_v21, %v164_v23 }
 0x18d   :  { %v162_v26 = vrot.slane %v161_v24, 1  ;;  %v166_v27 = vrot.slane %v165_v25, 2 }
 0x18f   :  { %v163_v28 = vmax.f32 %v161_v24, %v162_v26  ;;  %v167_v29 = vmax.f32 %v165_v25, %v166_v27 }
 0x191   :  { %v170_v30 = vsub.f32 %v154_v18, %v163_v28  ;;  %v168_v31 = vrot.slane %v167_v29, 1 }
 0x193   :  { %v172_v32 = vmul.f32 1.442695, %v170_v30  ;;  %v169_v33 = vmax.f32 %v167_v29, %v168_v31 }
 0x195   :  { %261 = vpow2.f32 %v172_v32  ;;  %v171_v34 = vsub.f32 %v157_v21, %v169_v33 }
 0x197   :  { %v174_v35 = vmul.f32 1.442695, %v171_v34 }
 0x199   :  { %263 = vpow2.f32 %v174_v35 }
 0x1a2   :  { %v262_v36 = vpop.eup %261 }
 0x1a3   :  { %v176_v37 = vrot.slane %v262_v36, 4 }
 0x1a5   :  { %v177_v38 = vadd.f32 %v262_v36, %v176_v37 }
 0x1a6   :  { %v264_v39 = vpop.eup %263 }
 0x1a7   :  { %v182_v40 = vrot.slane %v264_v39, 4  ;;  %v178_v41 = vrot.slane %v177_v38, 2 }
 0x1a9   :  { %v183_v42 = vadd.f32 %v264_v39, %v182_v40  ;;  %v179_v43 = vadd.f32 %v178_v41, %v177_v38 }
 0x1ab   :  { %v180_v44 = vrot.slane %v179_v43, 1  ;;  %v184_v45 = vrot.slane %v183_v42, 2 }
 0x1ad   :  { %v181_v46 = vadd.f32 %v180_v44, %v179_v43  ;;  %v185_v47 = vadd.f32 %v184_v45, %v183_v42 }
 0x1af   :  { %v186_v48 = vrot.slane %v185_v47, 1  ;;  %265 = vrcp.f32 %v181_v46 }
 0x1b1   :  { %v187_v49 = vadd.f32 %v186_v48, %v185_v47 }
 0x1b3   :  { %267 = vrcp.f32 %v187_v49 }
 0x1bc   :  { %v266_v50 = vpop.eup %265 }
 0x1bd   :  { %v190_v51 = vmul.f32 %v266_v50, %v262_v36 }
 0x1bf   :  { %v192_v52 = vmul.f32 %v190_v51, %v371_v2 }
 0x1c0   :  { %v268_v53 = vpop.eup %267 }
 0x1c1   :  { %v191_v54 = vmul.f32 %v268_v53, %v264_v39  ;;  %v194_v55 = vsel %vm59_vm0, %v192_v52, 0.0 }
 0x1c2   :  { %v195_v56 = vrot.slane %v194_v55, 4 }
 0x1c3   :  { %v193_v57 = vmul.f32 %v191_v54, %v375_v5 }
 0x1c4   :  { %v196_v58 = vadd.f32 %v195_v56, %v194_v55 }
 0x1c5   :  { %v201_v59 = vsel %vm59_vm0, %v193_v57, 0.0 }
 0x1c6   :  { %v197_v60 = vrot.slane %v196_v58, 2  ;;  %v202_v61 = vrot.slane %v201_v59, 4 }
 0x1c8   :  { %v198_v62 = vadd.f32 %v197_v60, %v196_v58  ;;  %v203_v63 = vadd.f32 %v202_v61, %v201_v59 }
 0x1ca   :  { %v204_v0 = vrot.slane %v203_v63, 2  ;;  %v199_v1 = vrot.slane %v198_v62, 1 }
 0x1cc   :  { %v205_v3 = vadd.f32 %v204_v0, %v203_v63  ;;  %v200_v2 = vadd.f32 %v199_v1, %v198_v62 }
 0x1ce   :  { %v206_v4 = vrot.slane %v205_v3, 1 }
 0x1d0   :  { %v207_v6 = vadd.f32 %v206_v4, %v205_v3 }
 0x1d2   :  { %v211_v7 = vsel %vm210_vm1, %v207_v6, %v200_v2 }
 0x1d3   :  { %214 = vst.msk [vmem:[#allocation7] sm:$0x3] %vm213_vm2, %v211_v7 }
 0x1d4   :  { %320 = shalt.err (!%p317_p0)
}
 0x1d5   :  { %224 = dma.vmem_to_hbm [thread:$0]  %s222_s3, 32, %s398_s4, [#allocation4]  }
 0x1d6   :  { %333 = dma.done.wait [#allocation4], 32  }
 0x1d7   :  { %334 = vsyncadd [#allocation4], 4294967264 }
 0x1d8   :  { %228 = vsyncpa [#allocation3], 1 }
 0x1d9   :  { %229 = vsyncpa [#allocation6], 1 }
 0x1da   :  { %230 = vsyncpa [#allocation4], 1 }

</bundles_post_ra>
